<compile_context>
chip_gen: v5e
topology: v5e:2x2
jax: 0.10.0
libtpu: 0.0.40
codegen_flags: <defaults>
</compile_context>

<pallas_src>
import functools

import jax
import jax.numpy as jnp
from jax import lax
from jax.experimental import pallas as pl
from jax.experimental.pallas import tpu as pltpu


def _mbgcn_forward_kernel(item_ids_sref,     # SMEM prefetch: (B*N,) int32 item ids
                          u_ref,             # VMEM in:  (1, 1, D) user row for this step
                          item_tbl_ref,      # ANY/HBM:  (num_items, D) full item table
                          pred_ref,          # VMEM out: (1, 1, N)
                          l2_ref,            # VMEM out: (1, 1, 1) per-user L2 partial
                          item_buf,          # VMEM scratch: (N, D) gathered item rows
                          copy_sems,         # DMA semaphores: (N,)
                          *, n_items):
    b = pl.program_id(0)

    # ---- In-kernel gather: DMA the N item rows for user b straight HBM -> VMEM.
    for n in range(n_items):
        idx = item_ids_sref[b * n_items + n]
        pltpu.make_async_copy(item_tbl_ref.at[idx], item_buf.at[n],
                              copy_sems.at[n]).start()
    for n in range(n_items):
        pltpu.make_async_copy(item_tbl_ref.at[0], item_buf.at[n],
                              copy_sems.at[n]).wait()

    u_row = u_ref[0]          # (1, D) — user row, broadcast implicitly over N
    it = item_buf[...]        # (N, D) — gathered item rows

    # predict: dot over the embedding dim via the MXU, f32 accumulation.
    pred = lax.dot_general(
        u_row, it,
        dimension_numbers=(((1,), (1,)), ((), ())),
        preferred_element_type=jnp.float32,
        precision=lax.Precision.HIGHEST)              # (1, N)
    pred_ref[...] = pred.reshape(1, 1, n_items)

    # regularize partial: the expanded user row appears N times; items once.
    uf = u_row.astype(jnp.float32)
    itf = it.astype(jnp.float32)
    l2_partial = float(n_items) * jnp.sum(uf * uf) + jnp.sum(itf * itf)
    l2_ref[...] = l2_partial.reshape(1, 1, 1)


def mbgcn_base_forward(users, items, user_table, item_table, l2_norm):
    """Forward pass of ModelBase (MF realization of propagate/predict).

    users: (B,) int32, items: (B, N) int32
    user_table: (num_users, D), item_table: (num_items, D)
    Returns (pred (B, N) f32, L2_loss scalar f32).
    """
    B, N = items.shape
    D = user_table.shape[1]

    # Scalar-prefetched item ids (flattened -> minimal SMEM padding).
    item_ids = items.reshape(-1).astype(jnp.int32)
    # Tiny (B, D) user gather; NO (B, N, D) broadcast tensor is materialized.
    u_rows = user_table[users].reshape(B, 1, D)

    kernel = functools.partial(_mbgcn_forward_kernel, n_items=N)

    pred3, l2_partials = pl.pallas_call(
        kernel,
        out_shape=(
            jax.ShapeDtypeStruct((B, 1, N), jnp.float32),
            jax.ShapeDtypeStruct((B, 1, 1), jnp.float32),
        ),
        grid_spec=pltpu.PrefetchScalarGridSpec(
            num_scalar_prefetch=1,
            grid=(B,),
            in_specs=[
                pl.BlockSpec((1, 1, D), lambda b, idx_ref: (b, 0, 0)),
                pl.BlockSpec(memory_space=pl.ANY),     # item table stays in HBM
            ],
            out_specs=[
                pl.BlockSpec((1, 1, N), lambda b, idx_ref: (b, 0, 0)),
                pl.BlockSpec((1, 1, 1), lambda b, idx_ref: (b, 0, 0)),
            ],
            scratch_shapes=[
                pltpu.VMEM((N, D), item_table.dtype),
                pltpu.SemaphoreType.DMA((N,)),
            ],
        ),
        compiler_params=pltpu.CompilerParams(
            dimension_semantics=("parallel",)),
    )(item_ids, u_rows, item_table)

    pred = pred3.reshape(B, N)
    l2 = jnp.float32(l2_norm) * jnp.sum(l2_partials)
    return pred, l2


def xavier_normal(key, shape, dtype=jnp.float32):
    # Matches nn.init.xavier_normal_ for a 2-D tensor.
    fan_out, fan_in = shape[0], shape[1]
    std = (2.0 / (fan_in + fan_out)) ** 0.5
    return std * jax.random.normal(key, shape, dtype=dtype)


if __name__ == "__main__":
    # Synthetic config (args.create_embeddings == True path).
    num_users = 32
    num_items = 64
    embed_size = 32          # args.embedding_size
    l2_norm = 1e-4           # args.L2_norm
    B, N = 4, 8              # batch of users, items-per-user

    key = jax.random.PRNGKey(0)
    k_item, k_user, k_u_idx, k_i_idx = jax.random.split(key, 4)

    item_embedding = xavier_normal(k_item, (num_items, embed_size))
    user_embedding = xavier_normal(k_user, (num_users, embed_size))

    users = jax.random.randint(k_u_idx, (B,), 0, num_users, dtype=jnp.int32)
    items = jax.random.randint(k_i_idx, (B, N), 0, num_items, dtype=jnp.int32)

    pred, l2_loss = mbgcn_base_forward(users, items, user_embedding,
                                       item_embedding, l2_norm)
    jax.block_until_ready((pred, l2_loss))

    # Reference check against plain JAX (same math as the PyTorch forward).
    u_e = jnp.broadcast_to(user_embedding[users][:, None, :], (B, N, embed_size))
    i_e = item_embedding[items]
    pred_ref = jnp.sum(u_e * i_e, axis=-1)
    l2_ref = l2_norm * (jnp.sum(u_e ** 2) + jnp.sum(i_e ** 2))
    assert jnp.allclose(pred, pred_ref, atol=1e-3, rtol=1e-3)
    assert jnp.allclose(l2_loss, l2_ref, atol=1e-5, rtol=1e-4)

    print("KERNEL_OK")
</pallas_src>

<mosaic_0001>
module attributes {stable_mosaic.version = 11 : i64} {
  func.func @_mbgcn_forward_kernel(%arg0: i32, %arg1: memref<32xi32, #tpu.memory_space<smem>>, %arg2: memref<1x1x32xf32, #tpu.memory_space<vmem>>, %arg3: memref<64x32xf32, #tpu.memory_space<any>>, %arg4: memref<1x1x8xf32, #tpu.memory_space<vmem>>, %arg5: memref<1x1x1xf32, #tpu.memory_space<vmem>>, %arg6: memref<8x32xf32, #tpu.memory_space<vmem>>, %arg7: memref<8x!tpu.dma_semaphore, #tpu.memory_space<semaphore_mem>>) attributes {dimension_semantics = [#tpu.dimension_semantics<parallel>], iteration_bounds = array<i64: 4>, scalar_prefetch = 1 : i64, scratch_operands = 2 : i64, tpu.core_type = #tpu.core_type<tc>, window_params = [{transform_indices = @transform_0, window_bounds = array<i64: 1, 1, 32>}, {}, {transform_indices = @transform_2, window_bounds = array<i64: 1, 1, 8>}, {transform_indices = @transform_3, window_bounds = array<i64: 1, 1, 1>}]} {
    %c8_i32 = arith.constant 8 : i32
    %0 = arith.muli %arg0, %c8_i32 : i32
    %c0_i32 = arith.constant 0 : i32
    %1 = arith.addi %0, %c0_i32 : i32
    %2 = arith.index_cast %1 : i32 to index
    %3 = memref.load %arg1[%2] : memref<32xi32, #tpu.memory_space<smem>>
    %c0_i32_0 = arith.constant 0 : i32
    %c0_i32_1 = arith.constant 0 : i32
    %c0_i32_2 = arith.constant 0 : i32
    %4 = tpu.memref_slice %arg3[%3, %c0_i32_2] : memref<64x32xf32, #tpu.memory_space<any>> -> memref<1x32xf32, #tpu.memory_space<any>>
    %5 = tpu.memref_squeeze %4 : memref<1x32xf32, #tpu.memory_space<any>> -> memref<32xf32, #tpu.memory_space<any>>
    %c0_i32_3 = arith.constant 0 : i32
    %6 = tpu.memref_slice %arg6[%c0_i32_0, %c0_i32_3] : memref<8x32xf32, #tpu.memory_space<vmem>> -> memref<1x32xf32, #tpu.memory_space<vmem>>
    %7 = tpu.memref_squeeze %6 : memref<1x32xf32, #tpu.memory_space<vmem>> -> memref<32xf32, #tpu.memory_space<vmem>>
    %8 = tpu.memref_slice %arg7[%c0_i32_1] : memref<8x!tpu.dma_semaphore, #tpu.memory_space<semaphore_mem>> -> memref<1x!tpu.dma_semaphore, #tpu.memory_space<semaphore_mem>>
    %9 = tpu.memref_squeeze %8 : memref<1x!tpu.dma_semaphore, #tpu.memory_space<semaphore_mem>> -> memref<!tpu.dma_semaphore, #tpu.memory_space<semaphore_mem>>
    tpu.enqueue_dma source(%5 : memref<32xf32, #tpu.memory_space<any>>) target(%7 : memref<32xf32, #tpu.memory_space<vmem>>) target_semaphore(%9 : memref<!tpu.dma_semaphore, #tpu.memory_space<semaphore_mem>>)
    %c8_i32_4 = arith.constant 8 : i32
    %10 = arith.muli %arg0, %c8_i32_4 : i32
    %c1_i32 = arith.constant 1 : i32
    %11 = arith.addi %10, %c1_i32 : i32
    %12 = arith.index_cast %11 : i32 to index
    %13 = memref.load %arg1[%12] : memref<32xi32, #tpu.memory_space<smem>>
    %c1_i32_5 = arith.constant 1 : i32
    %c1_i32_6 = arith.constant 1 : i32
    %c0_i32_7 = arith.constant 0 : i32
    %14 = tpu.memref_slice %arg3[%13, %c0_i32_7] : memref<64x32xf32, #tpu.memory_space<any>> -> memref<1x32xf32, #tpu.memory_space<any>>
    %15 = tpu.memref_squeeze %14 : memref<1x32xf32, #tpu.memory_space<any>> -> memref<32xf32, #tpu.memory_space<any>>
    %c0_i32_8 = arith.constant 0 : i32
    %16 = tpu.memref_slice %arg6[%c1_i32_5, %c0_i32_8] : memref<8x32xf32, #tpu.memory_space<vmem>> -> memref<1x32xf32, #tpu.memory_space<vmem>>
    %17 = tpu.memref_squeeze %16 : memref<1x32xf32, #tpu.memory_space<vmem>> -> memref<32xf32, #tpu.memory_space<vmem>>
    %18 = tpu.memref_slice %arg7[%c1_i32_6] : memref<8x!tpu.dma_semaphore, #tpu.memory_space<semaphore_mem>> -> memref<1x!tpu.dma_semaphore, #tpu.memory_space<semaphore_mem>>
    %19 = tpu.memref_squeeze %18 : memref<1x!tpu.dma_semaphore, #tpu.memory_space<semaphore_mem>> -> memref<!tpu.dma_semaphore, #tpu.memory_space<semaphore_mem>>
    tpu.enqueue_dma source(%15 : memref<32xf32, #tpu.memory_space<any>>) target(%17 : memref<32xf32, #tpu.memory_space<vmem>>) target_semaphore(%19 : memref<!tpu.dma_semaphore, #tpu.memory_space<semaphore_mem>>)
    %c8_i32_9 = arith.constant 8 : i32
    %20 = arith.muli %arg0, %c8_i32_9 : i32
    %c2_i32 = arith.constant 2 : i32
    %21 = arith.addi %20, %c2_i32 : i32
    %22 = arith.index_cast %21 : i32 to index
    %23 = memref.load %arg1[%22] : memref<32xi32, #tpu.memory_space<smem>>
    %c2_i32_10 = arith.constant 2 : i32
    %c2_i32_11 = arith.constant 2 : i32
    %c0_i32_12 = arith.constant 0 : i32
    %24 = tpu.memref_slice %arg3[%23, %c0_i32_12] : memref<64x32xf32, #tpu.memory_space<any>> -> memref<1x32xf32, #tpu.memory_space<any>>
    %25 = tpu.memref_squeeze %24 : memref<1x32xf32, #tpu.memory_space<any>> -> memref<32xf32, #tpu.memory_space<any>>
    %c0_i32_13 = arith.constant 0 : i32
    %26 = tpu.memref_slice %arg6[%c2_i32_10, %c0_i32_13] : memref<8x32xf32, #tpu.memory_space<vmem>> -> memref<1x32xf32, #tpu.memory_space<vmem>>
    %27 = tpu.memref_squeeze %26 : memref<1x32xf32, #tpu.memory_space<vmem>> -> memref<32xf32, #tpu.memory_space<vmem>>
    %28 = tpu.memref_slice %arg7[%c2_i32_11] : memref<8x!tpu.dma_semaphore, #tpu.memory_space<semaphore_mem>> -> memref<1x!tpu.dma_semaphore, #tpu.memory_space<semaphore_mem>>
    %29 = tpu.memref_squeeze %28 : memref<1x!tpu.dma_semaphore, #tpu.memory_space<semaphore_mem>> -> memref<!tpu.dma_semaphore, #tpu.memory_space<semaphore_mem>>
    tpu.enqueue_dma source(%25 : memref<32xf32, #tpu.memory_space<any>>) target(%27 : memref<32xf32, #tpu.memory_space<vmem>>) target_semaphore(%29 : memref<!tpu.dma_semaphore, #tpu.memory_space<semaphore_mem>>)
    %c8_i32_14 = arith.constant 8 : i32
    %30 = arith.muli %arg0, %c8_i32_14 : i32
    %c3_i32 = arith.constant 3 : i32
    %31 = arith.addi %30, %c3_i32 : i32
    %32 = arith.index_cast %31 : i32 to index
    %33 = memref.load %arg1[%32] : memref<32xi32, #tpu.memory_space<smem>>
    %c3_i32_15 = arith.constant 3 : i32
    %c3_i32_16 = arith.constant 3 : i32
    %c0_i32_17 = arith.constant 0 : i32
    %34 = tpu.memref_slice %arg3[%33, %c0_i32_17] : memref<64x32xf32, #tpu.memory_space<any>> -> memref<1x32xf32, #tpu.memory_space<any>>
    %35 = tpu.memref_squeeze %34 : memref<1x32xf32, #tpu.memory_space<any>> -> memref<32xf32, #tpu.memory_space<any>>
    %c0_i32_18 = arith.constant 0 : i32
    %36 = tpu.memref_slice %arg6[%c3_i32_15, %c0_i32_18] : memref<8x32xf32, #tpu.memory_space<vmem>> -> memref<1x32xf32, #tpu.memory_space<vmem>>
    %37 = tpu.memref_squeeze %36 : memref<1x32xf32, #tpu.memory_space<vmem>> -> memref<32xf32, #tpu.memory_space<vmem>>
    %38 = tpu.memref_slice %arg7[%c3_i32_16] : memref<8x!tpu.dma_semaphore, #tpu.memory_space<semaphore_mem>> -> memref<1x!tpu.dma_semaphore, #tpu.memory_space<semaphore_mem>>
    %39 = tpu.memref_squeeze %38 : memref<1x!tpu.dma_semaphore, #tpu.memory_space<semaphore_mem>> -> memref<!tpu.dma_semaphore, #tpu.memory_space<semaphore_mem>>
    tpu.enqueue_dma source(%35 : memref<32xf32, #tpu.memory_space<any>>) target(%37 : memref<32xf32, #tpu.memory_space<vmem>>) target_semaphore(%39 : memref<!tpu.dma_semaphore, #tpu.memory_space<semaphore_mem>>)
    %c8_i32_19 = arith.constant 8 : i32
    %40 = arith.muli %arg0, %c8_i32_19 : i32
    %c4_i32 = arith.constant 4 : i32
    %41 = arith.addi %40, %c4_i32 : i32
    %42 = arith.index_cast %41 : i32 to index
    %43 = memref.load %arg1[%42] : memref<32xi32, #tpu.memory_space<smem>>
    %c4_i32_20 = arith.constant 4 : i32
    %c4_i32_21 = arith.constant 4 : i32
    %c0_i32_22 = arith.constant 0 : i32
    %44 = tpu.memref_slice %arg3[%43, %c0_i32_22] : memref<64x32xf32, #tpu.memory_space<any>> -> memref<1x32xf32, #tpu.memory_space<any>>
    %45 = tpu.memref_squeeze %44 : memref<1x32xf32, #tpu.memory_space<any>> -> memref<32xf32, #tpu.memory_space<any>>
    %c0_i32_23 = arith.constant 0 : i32
    %46 = tpu.memref_slice %arg6[%c4_i32_20, %c0_i32_23] : memref<8x32xf32, #tpu.memory_space<vmem>> -> memref<1x32xf32, #tpu.memory_space<vmem>>
    %47 = tpu.memref_squeeze %46 : memref<1x32xf32, #tpu.memory_space<vmem>> -> memref<32xf32, #tpu.memory_space<vmem>>
    %48 = tpu.memref_slice %arg7[%c4_i32_21] : memref<8x!tpu.dma_semaphore, #tpu.memory_space<semaphore_mem>> -> memref<1x!tpu.dma_semaphore, #tpu.memory_space<semaphore_mem>>
    %49 = tpu.memref_squeeze %48 : memref<1x!tpu.dma_semaphore, #tpu.memory_space<semaphore_mem>> -> memref<!tpu.dma_semaphore, #tpu.memory_space<semaphore_mem>>
    tpu.enqueue_dma source(%45 : memref<32xf32, #tpu.memory_space<any>>) target(%47 : memref<32xf32, #tpu.memory_space<vmem>>) target_semaphore(%49 : memref<!tpu.dma_semaphore, #tpu.memory_space<semaphore_mem>>)
    %c8_i32_24 = arith.constant 8 : i32
    %50 = arith.muli %arg0, %c8_i32_24 : i32
    %c5_i32 = arith.constant 5 : i32
    %51 = arith.addi %50, %c5_i32 : i32
    %52 = arith.index_cast %51 : i32 to index
    %53 = memref.load %arg1[%52] : memref<32xi32, #tpu.memory_space<smem>>
    %c5_i32_25 = arith.constant 5 : i32
    %c5_i32_26 = arith.constant 5 : i32
    %c0_i32_27 = arith.constant 0 : i32
    %54 = tpu.memref_slice %arg3[%53, %c0_i32_27] : memref<64x32xf32, #tpu.memory_space<any>> -> memref<1x32xf32, #tpu.memory_space<any>>
    %55 = tpu.memref_squeeze %54 : memref<1x32xf32, #tpu.memory_space<any>> -> memref<32xf32, #tpu.memory_space<any>>
    %c0_i32_28 = arith.constant 0 : i32
    %56 = tpu.memref_slice %arg6[%c5_i32_25, %c0_i32_28] : memref<8x32xf32, #tpu.memory_space<vmem>> -> memref<1x32xf32, #tpu.memory_space<vmem>>
    %57 = tpu.memref_squeeze %56 : memref<1x32xf32, #tpu.memory_space<vmem>> -> memref<32xf32, #tpu.memory_space<vmem>>
    %58 = tpu.memref_slice %arg7[%c5_i32_26] : memref<8x!tpu.dma_semaphore, #tpu.memory_space<semaphore_mem>> -> memref<1x!tpu.dma_semaphore, #tpu.memory_space<semaphore_mem>>
    %59 = tpu.memref_squeeze %58 : memref<1x!tpu.dma_semaphore, #tpu.memory_space<semaphore_mem>> -> memref<!tpu.dma_semaphore, #tpu.memory_space<semaphore_mem>>
    tpu.enqueue_dma source(%55 : memref<32xf32, #tpu.memory_space<any>>) target(%57 : memref<32xf32, #tpu.memory_space<vmem>>) target_semaphore(%59 : memref<!tpu.dma_semaphore, #tpu.memory_space<semaphore_mem>>)
    %c8_i32_29 = arith.constant 8 : i32
    %60 = arith.muli %arg0, %c8_i32_29 : i32
    %c6_i32 = arith.constant 6 : i32
    %61 = arith.addi %60, %c6_i32 : i32
    %62 = arith.index_cast %61 : i32 to index
    %63 = memref.load %arg1[%62] : memref<32xi32, #tpu.memory_space<smem>>
    %c6_i32_30 = arith.constant 6 : i32
    %c6_i32_31 = arith.constant 6 : i32
    %c0_i32_32 = arith.constant 0 : i32
    %64 = tpu.memref_slice %arg3[%63, %c0_i32_32] : memref<64x32xf32, #tpu.memory_space<any>> -> memref<1x32xf32, #tpu.memory_space<any>>
    %65 = tpu.memref_squeeze %64 : memref<1x32xf32, #tpu.memory_space<any>> -> memref<32xf32, #tpu.memory_space<any>>
    %c0_i32_33 = arith.constant 0 : i32
    %66 = tpu.memref_slice %arg6[%c6_i32_30, %c0_i32_33] : memref<8x32xf32, #tpu.memory_space<vmem>> -> memref<1x32xf32, #tpu.memory_space<vmem>>
    %67 = tpu.memref_squeeze %66 : memref<1x32xf32, #tpu.memory_space<vmem>> -> memref<32xf32, #tpu.memory_space<vmem>>
    %68 = tpu.memref_slice %arg7[%c6_i32_31] : memref<8x!tpu.dma_semaphore, #tpu.memory_space<semaphore_mem>> -> memref<1x!tpu.dma_semaphore, #tpu.memory_space<semaphore_mem>>
    %69 = tpu.memref_squeeze %68 : memref<1x!tpu.dma_semaphore, #tpu.memory_space<semaphore_mem>> -> memref<!tpu.dma_semaphore, #tpu.memory_space<semaphore_mem>>
    tpu.enqueue_dma source(%65 : memref<32xf32, #tpu.memory_space<any>>) target(%67 : memref<32xf32, #tpu.memory_space<vmem>>) target_semaphore(%69 : memref<!tpu.dma_semaphore, #tpu.memory_space<semaphore_mem>>)
    %c8_i32_34 = arith.constant 8 : i32
    %70 = arith.muli %arg0, %c8_i32_34 : i32
    %c7_i32 = arith.constant 7 : i32
    %71 = arith.addi %70, %c7_i32 : i32
    %72 = arith.index_cast %71 : i32 to index
    %73 = memref.load %arg1[%72] : memref<32xi32, #tpu.memory_space<smem>>
    %c7_i32_35 = arith.constant 7 : i32
    %c7_i32_36 = arith.constant 7 : i32
    %c0_i32_37 = arith.constant 0 : i32
    %74 = tpu.memref_slice %arg3[%73, %c0_i32_37] : memref<64x32xf32, #tpu.memory_space<any>> -> memref<1x32xf32, #tpu.memory_space<any>>
    %75 = tpu.memref_squeeze %74 : memref<1x32xf32, #tpu.memory_space<any>> -> memref<32xf32, #tpu.memory_space<any>>
    %c0_i32_38 = arith.constant 0 : i32
    %76 = tpu.memref_slice %arg6[%c7_i32_35, %c0_i32_38] : memref<8x32xf32, #tpu.memory_space<vmem>> -> memref<1x32xf32, #tpu.memory_space<vmem>>
    %77 = tpu.memref_squeeze %76 : memref<1x32xf32, #tpu.memory_space<vmem>> -> memref<32xf32, #tpu.memory_space<vmem>>
    %78 = tpu.memref_slice %arg7[%c7_i32_36] : memref<8x!tpu.dma_semaphore, #tpu.memory_space<semaphore_mem>> -> memref<1x!tpu.dma_semaphore, #tpu.memory_space<semaphore_mem>>
    %79 = tpu.memref_squeeze %78 : memref<1x!tpu.dma_semaphore, #tpu.memory_space<semaphore_mem>> -> memref<!tpu.dma_semaphore, #tpu.memory_space<semaphore_mem>>
    tpu.enqueue_dma source(%75 : memref<32xf32, #tpu.memory_space<any>>) target(%77 : memref<32xf32, #tpu.memory_space<vmem>>) target_semaphore(%79 : memref<!tpu.dma_semaphore, #tpu.memory_space<semaphore_mem>>)
    %c0_i32_39 = arith.constant 0 : i32
    %c0_i32_40 = arith.constant 0 : i32
    %c0_i32_41 = arith.constant 0 : i32
    %c0_i32_42 = arith.constant 0 : i32
    %80 = tpu.memref_slice %arg3[%c0_i32_39, %c0_i32_42] : memref<64x32xf32, #tpu.memory_space<any>> -> memref<1x32xf32, #tpu.memory_space<any>>
    %81 = tpu.memref_squeeze %80 : memref<1x32xf32, #tpu.memory_space<any>> -> memref<32xf32, #tpu.memory_space<any>>
    %c0_i32_43 = arith.constant 0 : i32
    %82 = tpu.memref_slice %arg6[%c0_i32_40, %c0_i32_43] : memref<8x32xf32, #tpu.memory_space<vmem>> -> memref<1x32xf32, #tpu.memory_space<vmem>>
    %83 = tpu.memref_squeeze %82 : memref<1x32xf32, #tpu.memory_space<vmem>> -> memref<32xf32, #tpu.memory_space<vmem>>
    %84 = tpu.memref_slice %arg7[%c0_i32_41] : memref<8x!tpu.dma_semaphore, #tpu.memory_space<semaphore_mem>> -> memref<1x!tpu.dma_semaphore, #tpu.memory_space<semaphore_mem>>
    %85 = tpu.memref_squeeze %84 : memref<1x!tpu.dma_semaphore, #tpu.memory_space<semaphore_mem>> -> memref<!tpu.dma_semaphore, #tpu.memory_space<semaphore_mem>>
    tpu.wait_dma2 semaphore(%85 : memref<!tpu.dma_semaphore, #tpu.memory_space<semaphore_mem>>) src(%81 : memref<32xf32, #tpu.memory_space<any>>) dst(%83 : memref<32xf32, #tpu.memory_space<vmem>>)
    %c0_i32_44 = arith.constant 0 : i32
    %c1_i32_45 = arith.constant 1 : i32
    %c1_i32_46 = arith.constant 1 : i32
    %c0_i32_47 = arith.constant 0 : i32
    %86 = tpu.memref_slice %arg3[%c0_i32_44, %c0_i32_47] : memref<64x32xf32, #tpu.memory_space<any>> -> memref<1x32xf32, #tpu.memory_space<any>>
    %87 = tpu.memref_squeeze %86 : memref<1x32xf32, #tpu.memory_space<any>> -> memref<32xf32, #tpu.memory_space<any>>
    %c0_i32_48 = arith.constant 0 : i32
    %88 = tpu.memref_slice %arg6[%c1_i32_45, %c0_i32_48] : memref<8x32xf32, #tpu.memory_space<vmem>> -> memref<1x32xf32, #tpu.memory_space<vmem>>
    %89 = tpu.memref_squeeze %88 : memref<1x32xf32, #tpu.memory_space<vmem>> -> memref<32xf32, #tpu.memory_space<vmem>>
    %90 = tpu.memref_slice %arg7[%c1_i32_46] : memref<8x!tpu.dma_semaphore, #tpu.memory_space<semaphore_mem>> -> memref<1x!tpu.dma_semaphore, #tpu.memory_space<semaphore_mem>>
    %91 = tpu.memref_squeeze %90 : memref<1x!tpu.dma_semaphore, #tpu.memory_space<semaphore_mem>> -> memref<!tpu.dma_semaphore, #tpu.memory_space<semaphore_mem>>
    tpu.wait_dma2 semaphore(%91 : memref<!tpu.dma_semaphore, #tpu.memory_space<semaphore_mem>>) src(%87 : memref<32xf32, #tpu.memory_space<any>>) dst(%89 : memref<32xf32, #tpu.memory_space<vmem>>)
    %c0_i32_49 = arith.constant 0 : i32
    %c2_i32_50 = arith.constant 2 : i32
    %c2_i32_51 = arith.constant 2 : i32
    %c0_i32_52 = arith.constant 0 : i32
    %92 = tpu.memref_slice %arg3[%c0_i32_49, %c0_i32_52] : memref<64x32xf32, #tpu.memory_space<any>> -> memref<1x32xf32, #tpu.memory_space<any>>
    %93 = tpu.memref_squeeze %92 : memref<1x32xf32, #tpu.memory_space<any>> -> memref<32xf32, #tpu.memory_space<any>>
    %c0_i32_53 = arith.constant 0 : i32
    %94 = tpu.memref_slice %arg6[%c2_i32_50, %c0_i32_53] : memref<8x32xf32, #tpu.memory_space<vmem>> -> memref<1x32xf32, #tpu.memory_space<vmem>>
    %95 = tpu.memref_squeeze %94 : memref<1x32xf32, #tpu.memory_space<vmem>> -> memref<32xf32, #tpu.memory_space<vmem>>
    %96 = tpu.memref_slice %arg7[%c2_i32_51] : memref<8x!tpu.dma_semaphore, #tpu.memory_space<semaphore_mem>> -> memref<1x!tpu.dma_semaphore, #tpu.memory_space<semaphore_mem>>
    %97 = tpu.memref_squeeze %96 : memref<1x!tpu.dma_semaphore, #tpu.memory_space<semaphore_mem>> -> memref<!tpu.dma_semaphore, #tpu.memory_space<semaphore_mem>>
    tpu.wait_dma2 semaphore(%97 : memref<!tpu.dma_semaphore, #tpu.memory_space<semaphore_mem>>) src(%93 : memref<32xf32, #tpu.memory_space<any>>) dst(%95 : memref<32xf32, #tpu.memory_space<vmem>>)
    %c0_i32_54 = arith.constant 0 : i32
    %c3_i32_55 = arith.constant 3 : i32
    %c3_i32_56 = arith.constant 3 : i32
    %c0_i32_57 = arith.constant 0 : i32
    %98 = tpu.memref_slice %arg3[%c0_i32_54, %c0_i32_57] : memref<64x32xf32, #tpu.memory_space<any>> -> memref<1x32xf32, #tpu.memory_space<any>>
    %99 = tpu.memref_squeeze %98 : memref<1x32xf32, #tpu.memory_space<any>> -> memref<32xf32, #tpu.memory_space<any>>
    %c0_i32_58 = arith.constant 0 : i32
    %100 = tpu.memref_slice %arg6[%c3_i32_55, %c0_i32_58] : memref<8x32xf32, #tpu.memory_space<vmem>> -> memref<1x32xf32, #tpu.memory_space<vmem>>
    %101 = tpu.memref_squeeze %100 : memref<1x32xf32, #tpu.memory_space<vmem>> -> memref<32xf32, #tpu.memory_space<vmem>>
    %102 = tpu.memref_slice %arg7[%c3_i32_56] : memref<8x!tpu.dma_semaphore, #tpu.memory_space<semaphore_mem>> -> memref<1x!tpu.dma_semaphore, #tpu.memory_space<semaphore_mem>>
    %103 = tpu.memref_squeeze %102 : memref<1x!tpu.dma_semaphore, #tpu.memory_space<semaphore_mem>> -> memref<!tpu.dma_semaphore, #tpu.memory_space<semaphore_mem>>
    tpu.wait_dma2 semaphore(%103 : memref<!tpu.dma_semaphore, #tpu.memory_space<semaphore_mem>>) src(%99 : memref<32xf32, #tpu.memory_space<any>>) dst(%101 : memref<32xf32, #tpu.memory_space<vmem>>)
    %c0_i32_59 = arith.constant 0 : i32
    %c4_i32_60 = arith.constant 4 : i32
    %c4_i32_61 = arith.constant 4 : i32
    %c0_i32_62 = arith.constant 0 : i32
    %104 = tpu.memref_slice %arg3[%c0_i32_59, %c0_i32_62] : memref<64x32xf32, #tpu.memory_space<any>> -> memref<1x32xf32, #tpu.memory_space<any>>
    %105 = tpu.memref_squeeze %104 : memref<1x32xf32, #tpu.memory_space<any>> -> memref<32xf32, #tpu.memory_space<any>>
    %c0_i32_63 = arith.constant 0 : i32
    %106 = tpu.memref_slice %arg6[%c4_i32_60, %c0_i32_63] : memref<8x32xf32, #tpu.memory_space<vmem>> -> memref<1x32xf32, #tpu.memory_space<vmem>>
    %107 = tpu.memref_squeeze %106 : memref<1x32xf32, #tpu.memory_space<vmem>> -> memref<32xf32, #tpu.memory_space<vmem>>
    %108 = tpu.memref_slice %arg7[%c4_i32_61] : memref<8x!tpu.dma_semaphore, #tpu.memory_space<semaphore_mem>> -> memref<1x!tpu.dma_semaphore, #tpu.memory_space<semaphore_mem>>
    %109 = tpu.memref_squeeze %108 : memref<1x!tpu.dma_semaphore, #tpu.memory_space<semaphore_mem>> -> memref<!tpu.dma_semaphore, #tpu.memory_space<semaphore_mem>>
    tpu.wait_dma2 semaphore(%109 : memref<!tpu.dma_semaphore, #tpu.memory_space<semaphore_mem>>) src(%105 : memref<32xf32, #tpu.memory_space<any>>) dst(%107 : memref<32xf32, #tpu.memory_space<vmem>>)
    %c0_i32_64 = arith.constant 0 : i32
    %c5_i32_65 = arith.constant 5 : i32
    %c5_i32_66 = arith.constant 5 : i32
    %c0_i32_67 = arith.constant 0 : i32
    %110 = tpu.memref_slice %arg3[%c0_i32_64, %c0_i32_67] : memref<64x32xf32, #tpu.memory_space<any>> -> memref<1x32xf32, #tpu.memory_space<any>>
    %111 = tpu.memref_squeeze %110 : memref<1x32xf32, #tpu.memory_space<any>> -> memref<32xf32, #tpu.memory_space<any>>
    %c0_i32_68 = arith.constant 0 : i32
    %112 = tpu.memref_slice %arg6[%c5_i32_65, %c0_i32_68] : memref<8x32xf32, #tpu.memory_space<vmem>> -> memref<1x32xf32, #tpu.memory_space<vmem>>
    %113 = tpu.memref_squeeze %112 : memref<1x32xf32, #tpu.memory_space<vmem>> -> memref<32xf32, #tpu.memory_space<vmem>>
    %114 = tpu.memref_slice %arg7[%c5_i32_66] : memref<8x!tpu.dma_semaphore, #tpu.memory_space<semaphore_mem>> -> memref<1x!tpu.dma_semaphore, #tpu.memory_space<semaphore_mem>>
    %115 = tpu.memref_squeeze %114 : memref<1x!tpu.dma_semaphore, #tpu.memory_space<semaphore_mem>> -> memref<!tpu.dma_semaphore, #tpu.memory_space<semaphore_mem>>
    tpu.wait_dma2 semaphore(%115 : memref<!tpu.dma_semaphore, #tpu.memory_space<semaphore_mem>>) src(%111 : memref<32xf32, #tpu.memory_space<any>>) dst(%113 : memref<32xf32, #tpu.memory_space<vmem>>)
    %c0_i32_69 = arith.constant 0 : i32
    %c6_i32_70 = arith.constant 6 : i32
    %c6_i32_71 = arith.constant 6 : i32
    %c0_i32_72 = arith.constant 0 : i32
    %116 = tpu.memref_slice %arg3[%c0_i32_69, %c0_i32_72] : memref<64x32xf32, #tpu.memory_space<any>> -> memref<1x32xf32, #tpu.memory_space<any>>
    %117 = tpu.memref_squeeze %116 : memref<1x32xf32, #tpu.memory_space<any>> -> memref<32xf32, #tpu.memory_space<any>>
    %c0_i32_73 = arith.constant 0 : i32
    %118 = tpu.memref_slice %arg6[%c6_i32_70, %c0_i32_73] : memref<8x32xf32, #tpu.memory_space<vmem>> -> memref<1x32xf32, #tpu.memory_space<vmem>>
    %119 = tpu.memref_squeeze %118 : memref<1x32xf32, #tpu.memory_space<vmem>> -> memref<32xf32, #tpu.memory_space<vmem>>
    %120 = tpu.memref_slice %arg7[%c6_i32_71] : memref<8x!tpu.dma_semaphore, #tpu.memory_space<semaphore_mem>> -> memref<1x!tpu.dma_semaphore, #tpu.memory_space<semaphore_mem>>
    %121 = tpu.memref_squeeze %120 : memref<1x!tpu.dma_semaphore, #tpu.memory_space<semaphore_mem>> -> memref<!tpu.dma_semaphore, #tpu.memory_space<semaphore_mem>>
    tpu.wait_dma2 semaphore(%121 : memref<!tpu.dma_semaphore, #tpu.memory_space<semaphore_mem>>) src(%117 : memref<32xf32, #tpu.memory_space<any>>) dst(%119 : memref<32xf32, #tpu.memory_space<vmem>>)
    %c0_i32_74 = arith.constant 0 : i32
    %c7_i32_75 = arith.constant 7 : i32
    %c7_i32_76 = arith.constant 7 : i32
    %c0_i32_77 = arith.constant 0 : i32
    %122 = tpu.memref_slice %arg3[%c0_i32_74, %c0_i32_77] : memref<64x32xf32, #tpu.memory_space<any>> -> memref<1x32xf32, #tpu.memory_space<any>>
    %123 = tpu.memref_squeeze %122 : memref<1x32xf32, #tpu.memory_space<any>> -> memref<32xf32, #tpu.memory_space<any>>
    %c0_i32_78 = arith.constant 0 : i32
    %124 = tpu.memref_slice %arg6[%c7_i32_75, %c0_i32_78] : memref<8x32xf32, #tpu.memory_space<vmem>> -> memref<1x32xf32, #tpu.memory_space<vmem>>
    %125 = tpu.memref_squeeze %124 : memref<1x32xf32, #tpu.memory_space<vmem>> -> memref<32xf32, #tpu.memory_space<vmem>>
    %126 = tpu.memref_slice %arg7[%c7_i32_76] : memref<8x!tpu.dma_semaphore, #tpu.memory_space<semaphore_mem>> -> memref<1x!tpu.dma_semaphore, #tpu.memory_space<semaphore_mem>>
    %127 = tpu.memref_squeeze %126 : memref<1x!tpu.dma_semaphore, #tpu.memory_space<semaphore_mem>> -> memref<!tpu.dma_semaphore, #tpu.memory_space<semaphore_mem>>
    tpu.wait_dma2 semaphore(%127 : memref<!tpu.dma_semaphore, #tpu.memory_space<semaphore_mem>>) src(%123 : memref<32xf32, #tpu.memory_space<any>>) dst(%125 : memref<32xf32, #tpu.memory_space<vmem>>)
    %c0 = arith.constant 0 : index
    %c0_79 = arith.constant 0 : index
    %c0_80 = arith.constant 0 : index
    %128 = vector.load %arg2[%c0, %c0_79, %c0_80] : memref<1x1x32xf32, #tpu.memory_space<vmem>>, vector<1x1x32xf32>
    %129 = vector.shape_cast %128 : vector<1x1x32xf32> to vector<1x32xf32>
    %c0_81 = arith.constant 0 : index
    %c0_82 = arith.constant 0 : index
    %130 = vector.load %arg6[%c0_81, %c0_82] : memref<8x32xf32, #tpu.memory_space<vmem>>, vector<8x32xf32>
    %cst = arith.constant dense<0.000000e+00> : vector<1x8xf32>
    %131 = tpu.matmul %129, %130, %cst {dimension_numbers = #tpu.dot_dimension_numbers<[1], [1], [0], [0], [0, 0, 1, 0], [], []>, precision = #tpu.contract_precision<fp32>} : vector<1x32xf32>, vector<8x32xf32>, vector<1x8xf32> -> vector<1x8xf32>
    %132 = vector.shape_cast %131 : vector<1x8xf32> to vector<1x1x8xf32>
    %c0_83 = arith.constant 0 : index
    %c0_84 = arith.constant 0 : index
    %c0_85 = arith.constant 0 : index
    %133 = vector.load %arg4[%c0_83, %c0_84, %c0_85] : memref<1x1x8xf32, #tpu.memory_space<vmem>>, vector<1x1x8xf32>
    tpu.vector_store %arg4[%c0_83, %c0_84, %c0_85], %132 {strides = array<i32>} : memref<1x1x8xf32, #tpu.memory_space<vmem>>, vector<1x1x8xf32>,
    %134 = arith.mulf %129, %129 : vector<1x32xf32>
    %135 = vector.shape_cast %134 : vector<1x32xf32> to vector<1x1x32xf32>
    %cst_86 = arith.constant dense<0.000000e+00> : vector<1xf32>
    %136 = vector.multi_reduction <add>, %135, %cst_86 [1, 2] : vector<1x1x32xf32> to vector<1xf32>
    %137 = vector.shape_cast %136 : vector<1xf32> to vector<1x1x1xf32>
    %138 = vector.extract %137[0, 0, 0] : f32 from vector<1x1x1xf32>
    %cst_87 = arith.constant 8.000000e+00 : f32
    %139 = arith.mulf %cst_87, %138 : f32
    %140 = arith.mulf %130, %130 : vector<8x32xf32>
    %141 = vector.shape_cast %140 : vector<8x32xf32> to vector<1x8x32xf32>
    %cst_88 = arith.constant dense<0.000000e+00> : vector<1xf32>
    %142 = vector.multi_reduction <add>, %141, %cst_88 [1, 2] : vector<1x8x32xf32> to vector<1xf32>
    %143 = vector.shape_cast %142 : vector<1xf32> to vector<1x1x1xf32>
    %144 = vector.extract %143[0, 0, 0] : f32 from vector<1x1x1xf32>
    %145 = arith.addf %139, %144 : f32
    %146 = vector.broadcast %145 : f32 to vector<1x1x1xf32>
    %c0_89 = arith.constant 0 : index
    %c0_90 = arith.constant 0 : index
    %c0_91 = arith.constant 0 : index
    %147 = vector.load %arg5[%c0_89, %c0_90, %c0_91] : memref<1x1x1xf32, #tpu.memory_space<vmem>>, vector<1x1x1xf32>
    tpu.vector_store %arg5[%c0_89, %c0_90, %c0_91], %146 {strides = array<i32>} : memref<1x1x1xf32, #tpu.memory_space<vmem>>, vector<1x1x1xf32>,
    return
  }
  func.func @transform_0(%arg0: i32, %arg1: memref<32xi32, #tpu.memory_space<smem>>) -> (i32, i32, i32) {
    %c0_i32 = arith.constant 0 : i32
    %c0_i32_0 = arith.constant 0 : i32
    %c0_i32_1 = arith.constant 0 : i32
    return %arg0, %c0_i32, %c0_i32_0 : i32, i32, i32
  }
  func.func @transform_2(%arg0: i32, %arg1: memref<32xi32, #tpu.memory_space<smem>>) -> (i32, i32, i32) {
    %c0_i32 = arith.constant 0 : i32
    %c0_i32_0 = arith.constant 0 : i32
    %c0_i32_1 = arith.constant 0 : i32
    return %arg0, %c0_i32, %c0_i32_0 : i32, i32, i32
  }
  func.func @transform_3(%arg0: i32, %arg1: memref<32xi32, #tpu.memory_space<smem>>) -> (i32, i32, i32) {
    %c0_i32 = arith.constant 0 : i32
    %c0_i32_0 = arith.constant 0 : i32
    %c0_i32_1 = arith.constant 0 : i32
    return %arg0, %c0_i32, %c0_i32_0 : i32, i32, i32
  }
}

</mosaic_0001>

<bundles_post_ra>
// kernel: tpu_custom_call.1
= control target key start
LH: loop header
LB: loop body
LE: loop exit
PB: predicated region body
PF: predicated region fallthrough
CT: control target
= control target key end

     0   :  { %s1003_s18 = smov [#allocation5]   ;;  %s1180_s0 = inlined_call_operand.vmem [shape: s32[32], index: 0, kind: input, shape index: {}]   ;;  %s1181_s1 = inlined_call_operand.vmem [shape: f32[4,1,32], index: 1, kind: input, shape index: {}]   ;;  %s1182_s2 = inlined_call_operand.vmem [shape: f32[64,32], index: 2, kind: input, shape index: {}]   ;;  %s1183_s3 = inlined_call_operand.hbm [shape: f32[4,1,8], index: 3, kind: output, shape index: {0}]   ;;  %s1184_s4 = inlined_call_operand.vmem [shape: f32[4,1,1], index: 4, kind: output, shape index: {1}]  }
   0x1   :  { %s11_s17 = sshll.u32 %s1180_s0, 4  ;;  %s12_s17 = int_to_ptr.vmem [resolvable:$true] %s11_s17 }
   0x2   :  { %14 = dma.vmem_to_smem %s12_s17, 16, %s1003_s18, [#allocation4] }
   0x3   :  { %965 = dma.done.wait [#allocation4], 16 }
   0x4   :  { %966 = vsyncadd [#allocation4], 4294967280 }
   0x5   :  { %17 = sfence }
   0x6   :  { %18 = vsyncpa [#allocation7], 0 }
   0x7   :  { %20 = vsyncpa [#allocation7 + $0x1], 0  ;;  %s1032_s19 = smov 0   ;;  %s1034_s20 = smov 0  }
   0x8   :  { %s1036_s21 = smov 0   ;;  %s1038_s22 = smov 0  }
   0x9 LB: > { %s1053_s0 = sadd.s32 4294967295, %s1001_s22   ;;  %s850_s23 = sadd.s32 4294967294, %s1001_s22   ;;  %s1001_s22 = sphi %s1038_s22, %s1191_s22   ;;  %s997_s21 = sphi %s1036_s21, %s1190_s21   ;;  %s993_s20 = sphi %s1034_s20, %s1189_s20   ;;  %s989_s19 = sphi %s1032_s19, %s1188_s19  }
   0xa   : > { %s1057_s24 = sadd.s32 1, %s1001_s22   ;;  %s59_s25 = sadd.s32 1, %s997_s21 }
   0xb   : > { %s56_s26 = ssub.s32 %s1001_s22, %s1057_s24  ;;  %p69_p0 = scmp.ne.s32.totalorder %s997_s21, %s993_s20 }
   0xc   : > { %p57_p1 = scmp.eq.s32.totalorder %s56_s26, 0  ;;  %p70_p2 = scmp.eq.s32.totalorder %s1053_s0, 3 }
   0xd   : > { %p75_p3 = scmp.ne.s32.totalorder %s993_s20, %s989_s19  ;;  %p76_p4 = scmp.eq.s32.totalorder %s850_s23, 3 }
   0xe   : > { %s1068_s27 = scalar_select %p57_p1, %s997_s21, %s59_s25  }
   0xf   : > { %p1070_p5 = por %p70_p2, %p69_p0  ;;  %p1074_p6 = por %p76_p4, %p75_p3 }
  0x10   : > { %p853_p7 = scmp.ge.s32.totalorder %s1001_s22, 1  ;;  %p126_p8 = scmp.lt.s32.totalorder %s1001_s22, 5 }
  0x12   : > { %p127_p9 = pnand %p853_p7, %p126_p8 }
  0x13   : > { %s141_s30 = sand.u32 (!%p127_p9), 1, %s993_s20   ;;  %p148_p10 = scmp.lt.s32.totalorder (!%p127_p9), %s1053_s0, 3 }
  0x14   : > { %130 = sbr.rel (%p127_p9) target bundleno = 310 (0x136), region = 24  ;;  %s1083_s5 = sshll.u32 (!%p127_p9), %s1053_s0, 3 }
  0x15   : > { %s155_s7 = sld [smem:[#allocation5 + %s1083_s5]] (!%p127_p9)  ;;  %s1102_s17 = scalar_lea.vmem (!%p127_p9), [#allocation6], %s141_s30 }
  0x19   : > { %s1086_s6 = scalar_select %p148_p10, %s1053_s0, 3 }
  0x1b   : > { %s150_s10 = scalar_lea.vmem %s1181_s1, %s1086_s6  ;;  %s156_s16 = scalar_lea.vmem %s1182_s2, %s155_s7 }
  0x1c   : > { %v171_v0 = vld [vmem:[%s156_s16] sm:$0x1] }
  0x1d   : > { %172 = vst [vmem:[#allocation2] sm:$0x1] %v171_v0 }
  0x1e   : > { %190 = vsyncadd [#allocation3], 16  ;;  %s191_s18 = sadd.s32 1, %s1083_s5 }
  0x1f   : > { %s192_s23 = sld [smem:[#allocation5 + %s191_s18]] }
  0x25   : > { %s193_s8 = scalar_lea.vmem %s1182_s2, %s192_s23 }
  0x26   : > { %v210_v1 = vld [vmem:[%s193_s8] sm:$0x1] }
  0x27   : > { %211 = vst [vmem:[#allocation2 + $0x1] sm:$0x1] %v210_v1 }
  0x28   : > { %229 = vsyncadd [#allocation3 + $0x1], 16  ;;  %s230_s9 = sadd.s32 2, %s1083_s5 }
  0x29   : > { %s231_s11 = sld [smem:[#allocation5 + %s230_s9]] }
  0x2f   : > { %s232_s14 = scalar_lea.vmem %s1182_s2, %s231_s11 }
  0x30   : > { %v249_v2 = vld [vmem:[%s232_s14] sm:$0x1] }
  0x31   : > { %250 = vst [vmem:[#allocation2 + $0x2] sm:$0x1] %v249_v2 }
  0x32   : > { %268 = vsyncadd [#allocation3 + $0x2], 16  ;;  %s269_s15 = sadd.s32 3, %s1083_s5 }
  0x33   : > { %s270_s16 = sld [smem:[#allocation5 + %s269_s15]] }
  0x39   : > { %s271_s23 = scalar_lea.vmem %s1182_s2, %s270_s16 }
  0x3a   : > { %v288_v3 = vld [vmem:[%s271_s23] sm:$0x1] }
  0x3b   : > { %289 = vst [vmem:[#allocation2 + $0x3] sm:$0x1] %v288_v3 }
  0x3c   : > { %307 = vsyncadd [#allocation3 + $0x3], 16  ;;  %s308_s25 = sadd.s32 4, %s1083_s5 }
  0x3d   : > { %s309_s26 = sld [smem:[#allocation5 + %s308_s25]] }
  0x43   : > { %s310_s11 = scalar_lea.vmem %s1182_s2, %s309_s26 }
  0x44   : > { %v327_v4 = vld [vmem:[%s310_s11] sm:$0x1] }
  0x45   : > { %328 = vst [vmem:[#allocation2 + $0x4] sm:$0x1] %v327_v4 }
  0x46   : > { %346 = vsyncadd [#allocation3 + $0x4], 16  ;;  %s347_s7 = sadd.s32 5, %s1083_s5 }
  0x47   : > { %s348_s12 = sld [smem:[#allocation5 + %s347_s7]] }
  0x4d   : > { %s349_s13 = scalar_lea.vmem %s1182_s2, %s348_s12 }
  0x4e   : > { %v366_v5 = vld [vmem:[%s349_s13] sm:$0x1] }
  0x4f   : > { %367 = vst [vmem:[#allocation2 + $0x5] sm:$0x1] %v366_v5 }
  0x50   : > { %385 = vsyncadd [#allocation3 + $0x5], 16  ;;  %s386_s16 = sadd.s32 6, %s1083_s5 }
  0x51   : > { %s387_s18 = sld [smem:[#allocation5 + %s386_s16]] }
  0x57   : > { %s388_s26 = scalar_lea.vmem %s1182_s2, %s387_s18 }
  0x58   : > { %v405_v6 = vld [vmem:[%s388_s26] sm:$0x1] }
  0x59   : > { %406 = vst [vmem:[#allocation2 + $0x6] sm:$0x1] %v405_v6 }
  0x5a   : > { %424 = vsyncadd [#allocation3 + $0x6], 16  ;;  %s425_s8 = sadd.s32 7, %s1083_s5 }
  0x5b   : > { %s426_s9 = sld [smem:[#allocation5 + %s425_s8]] }
  0x61   : > { %s427_s12 = scalar_lea.vmem %s1182_s2, %s426_s9 }
  0x62   : > { %v444_v7 = vld [vmem:[%s427_s12] sm:$0x1] }
  0x63   : > { %445 = vst [vmem:[#allocation2 + $0x7] sm:$0x1] %v444_v7 }
  0x64   : > { %463 = vsyncadd [#allocation3 + $0x7], 16 }
  0x65   : > { %967 = dma.done.wait [#allocation3], 16 }
  0x66   : > { %968 = vsyncadd [#allocation3], 4294967280 }
  0x67   : > { %969 = dma.done.wait [#allocation3 + $0x1], 16 }
  0x68   : > { %970 = vsyncadd [#allocation3 + $0x1], 4294967280 }
  0x69   : > { %971 = dma.done.wait [#allocation3 + $0x2], 16 }
  0x6a   : > { %972 = vsyncadd [#allocation3 + $0x2], 4294967280 }
  0x6b   : > { %973 = dma.done.wait [#allocation3 + $0x3], 16 }
  0x6c   : > { %974 = vsyncadd [#allocation3 + $0x3], 4294967280 }
  0x6d   : > { %975 = dma.done.wait [#allocation3 + $0x4], 16 }
  0x6e   : > { %976 = vsyncadd [#allocation3 + $0x4], 4294967280 }
  0x6f   : > { %977 = dma.done.wait [#allocation3 + $0x5], 16 }
  0x70   : > { %978 = vsyncadd [#allocation3 + $0x5], 4294967280 }
  0x71   : > { %979 = dma.done.wait [#allocation3 + $0x6], 16 }
  0x72   : > { %980 = vsyncadd [#allocation3 + $0x6], 4294967280 }
  0x73   : > { %981 = dma.done.wait [#allocation3 + $0x7], 16 }
  0x74   : > { %982 = vsyncadd [#allocation3 + $0x7], 4294967280  ;;  %v480_v8 = vld [vmem:[%s150_s10] sm:$0x1]  ;;  %vm638_vm0 = vcmask 253952   ;;  %vm482_vm1 = vcmask 261120   ;;  %s677_s13 = scalar_lea.hbm %s1183_s3, %s1053_s0 }
  0x75   : > { %v481_v9 = vld [vmem:[#allocation2] sm:$0xff]  ;;  %v637_v10 = vmul.f32 %v480_v8, %v480_v8  ;;  %v484_v12 = vsel %vm482_vm1, %v480_v8, 0  ;;  %s679_s16 = sshll.u32 %s1102_s17, 4  ;;  %s681_s18 = sshll.u32 %s677_s13, 4  ;;  %vm635_vm2 = vcmask 57344   ;;  %s680_s16 = int_to_ptr.vmem [resolvable:$true] %s679_s16  ;;  %s682_s18 = int_to_ptr.hbm [resolvable:$true] %s681_s18 }
  0x76   : > { %v487_v11 = vsel %vm482_vm1, %v481_v9, 0  ;;  %v506_v14 = vand.u32 4294901760, %v484_v12  ;;  %v650_v18 = vmul.f32 %v481_v9, %v481_v9  ;;  %s666_s23 = scalar_lea.sflag [#allocation7], %s141_s30  ;;  %s935_s25 = sshra.s32 %s682_s18, 4  ;;  %s936_s25 = int_to_ptr.hbm [resolvable:$true] %s935_s25 }
  0x77   : > { %v504_v13 = vand.u32 4294901760, %v487_v11  ;;  %v639_v15 = vsel %vm638_vm0, %v637_v10, 0.0  ;;  %s937_s26 = scalar_lea.hbm %s936_s25, 1  ;;  %s941_s9 = scalar_lea.hbm %s1183_s3, 4 }
  0x78   : > { %640 = vadd.xlane.f32.xlu0 %v639_v15  ;;  %v507_v17 = vsub.f32 %v484_v12, %v506_v14  ;;  %v651_v23 = vsel %vm482_vm1, %v650_v18, 0.0  ;;  %p938_p11 = scmp.ne.s32.totalorder %s936_s25, %s937_s26  ;;  %p942_p0 = scmp.lt.s32.totalorder %s936_s25, %s1183_s3 }
  0x79   : > { %v531_v16 = vsub.f32 %v487_v11, %v504_v13  ;;  %505 = vmatpush.xpose.msra.mxu0 %v504_v13  ;;  %581 = vmatpush.xpose.msra.mxu3 %v504_v13  ;;  %p943_p1 = scmp.lt.s32.totalorder %s941_s9, %s937_s26 }
  0x7a   : > { %v508_v20 = vand.u32 4294901760, %v507_v17  ;;  %p939_p12 = pnand %p938_p11, %p1070_p5 }
  0x7b   : > { %558 = vmatpush.xpose.msra.mxu2 %v531_v16  ;;  %v532_v19 = vand.u32 4294901760, %v531_v16  ;;  %p944_p2 = por %p943_p1, %p942_p0 }
  0x7c   : > { %v509_v22 = vsub.f32 %v507_v17, %v508_v20  ;;  %585 = vmatmul.f32.vlgmr.msra.gmra.mxu3 %v508_v20  ;;  %p940_p13 = pneg %p939_p12 }
  0x7d   : > { %v533_v21 = vsub.f32 %v531_v16, %v532_v19  ;;  %607 = vmatpush.xpose.msrb.mxu0 %v532_v19 }
  0x7e   : > { %561 = vmatmul.f32.vlgmr.msra.gmra.mxu2 %v507_v17  ;;  %v510_v25 = vand.u32 4294901760, %v509_v22  ;;  %p945_p3 = pnand %p944_p2, %p940_p13 }
  0x7f   : > { %v534_v24 = vand.u32 4294901760, %v533_v21 }
  0x80   : > { %652 = vadd.xlane.f32.xlu0 %v651_v23  ;;  %511 = vmatmul.f32.vlgmr.msra.gmra.mxu0 %v510_v25 }
  0x81   : > { %535 = vmatpush.xpose.msra.mxu1 %v534_v24 }
  0x84   : > { %537 = vmatmul.f32.vlgmr.msra.gmra.mxu1 %v506_v14 }
  0x85   : > { %629 = vmatpush.xpose.msrb.mxu1 %v504_v13 }
  0x88   : > { %609 = vmatmul.f32.vlgmr.msrb.gmra.mxu0 %v506_v14 }
  0x8c   : > { %631 = vmatmul.f32.vlgmr.msrb.gmra.mxu1 %v506_v14 }
  0xeb   : > { %v641_v26 = vpop.xlane.xlu0 %640 }
  0xec   : > { %v642_v27 = vrot.slane %v641_v26, 4 }
  0xee   : > { %v643_v28 = vadd.f32 %v642_v27, %v641_v26 }
  0xf0   : > { %v644_v29 = vrot.slane %v643_v28, 2 }
  0xf2   : > { %v645_v30 = vadd.f32 %v644_v29, %v643_v28 }
  0xf3   : > { %v653_v31 = vpop.xlane.xlu0 %652 }
  0xf4   : > { %v654_v32 = vrot.slane %v653_v31, 4  ;;  %v646_v33 = vrot.slane %v645_v30, 1 }
  0xf6   : > { %v655_v34 = vadd.f32 %v654_v32, %v653_v31  ;;  %v647_v35 = vadd.f32 %v646_v33, %v645_v30 }
  0xf8   : > { %v656_v36 = vrot.slane %v655_v34, 2  ;;  %865 = vpush %v647_v35 }
  0xfa   : > { %v657_v37 = vadd.f32 %v656_v36, %v655_v34 }
  0xfc   : > { %v658_v38 = vrot.slane %v657_v37, 1 }
  0xfd   : > { %v512_v40 = vpop.f32.mrf.mxu0 }
  0xfe   : > { %v659_v39 = vadd.f32 %v658_v38, %v657_v37 }
  0xff   : > { %v586_v45 = vpop.f32.mrf.mxu3 }
 0x100   : > { %867 = vpush %v659_v39 }
 0x101   : > { %v538_v41 = vpop.f32.mrf.mxu1  ;;  %v562_v43 = vpop.f32.mrf.mxu2 }
 0x102   : > { %v539_v42 = vadd.f32 %v538_v41, %v512_v40 }
 0x104   : > { %v563_v44 = vadd.f32 %v562_v43, %v539_v42 }
 0x105   : > { %v610_v46 = vpop.f32.mrf.mxu0 }
 0x106   : > { %v587_v47 = vadd.f32 %v586_v45, %v563_v44 }
 0x108   : > { %v611_v49 = vadd.f32 %v610_v46, %v587_v47 }
 0x109   : > { %v632_v48 = vpop.f32.mrf.mxu1 }
 0x10a   : > { %v633_v50 = vadd.f32 %v632_v48, %v611_v49 }
 0x10c   : > { %636 = vst.msk [vmem:[%s1102_s17] sm:$0x1] %vm635_vm2, %v633_v50 }
 0x10d   : > { %948 = shalt.err (!%p945_p3)
}
 0x10e   : > { %869 = dma.vmem_to_hbm [thread:$0]  (%p1070_p5), %s680_s16, 16, %s682_s18, %s666_s23   ;;  %vm663_vm3 = vcmask 0  }
 0x10f   : > { %s1187_s15 = scalar_lea.vmem %s1184_s4, %s1086_s6 }
 0x129   : > { %s866_s30 = spop %865 }
 0x12a   : > { %s649_s17 = smul.f32 8.0, %s866_s30 }
 0x131   : > { %s868_s12 = spop %867 }
 0x132   : > { %s661_s5 = sadd.f32 %s868_s12, %s649_s17 }
 0x134   : > { %v662_v51 = vstv %s661_s5 }
 0x135   : > { %664 = vst.msk [vmem:[%s1187_s15] sm:$0x1] %vm663_vm3, %v662_v51 }
 0x136 PF: > { %p875_p4 = scmp.ge.s32.totalorder %s1001_s22, 2  ;;  %s696_s13 = sand.u32 1, %s989_s19  }
 0x137   : > { %s697_s28 = scalar_lea.sflag [#allocation7], %s696_s13 }
 0x138   : > { %p872_p7 = pnand %p875_p4, %p1074_p6 }
 0x13a   : > { %p873_p5 = pneg %p872_p7 }
 0x13c   : > { %984 = dma.done.wait (%p873_p5), %s697_s28, 16  }
 0x13d   : > { %986 = vsyncadd (%p873_p5), %s697_s28, 4294967280  ;;  %p23_p8 = scmp.ge.s32.totalorder %s1057_s24, 6   ;;  %s1188_s19 = smov %s993_s20 }
 0x13e   : > { %s1189_s20 = smov %s997_s21  ;;  %s1190_s21 = smov %s1068_s27 }
 0x13f   : > { %s1191_s22 = smov %s1057_s24  ;;  %25 = sbr.rel (!%p23_p8) target bundleno = 9 (0x9), region = 372 }
 0x144   :  { %708 = vsyncpa [#allocation7], 1 }
 0x145   :  { %710 = vsyncpa [#allocation7 + $0x1], 1 }
 0x146   :  { %711 = vsyncmov [#allocation3] }
 0x149   :  { %s712_s22 = vpop.sfrf %711 }
 0x14a   :  { %p857_p6 = scmp.ne.s32.totalorder %s712_s22, 0 }
 0x14c   :  { %716 = shalt.err (%p857_p6)  }
 0x14d   :  { %718 = vsyncmov [#allocation3 + $0x1] }
 0x150   :  { %s719_s29 = vpop.sfrf %718 }
 0x151   :  { %p858_p9 = scmp.ne.s32.totalorder %s719_s29, 0 }
 0x153   :  { %723 = shalt.err (%p858_p9)  }
 0x154   :  { %725 = vsyncmov [#allocation3 + $0x2] }
 0x157   :  { %s726_s6 = vpop.sfrf %725 }
 0x158   :  { %p859_p10 = scmp.ne.s32.totalorder %s726_s6, 0 }
 0x15a   :  { %730 = shalt.err (%p859_p10)  }
 0x15b   :  { %732 = vsyncmov [#allocation3 + $0x3] }
 0x15e   :  { %s733_s16 = vpop.sfrf %732 }
 0x15f   :  { %p860_p11 = scmp.ne.s32.totalorder %s733_s16, 0 }
 0x161   :  { %737 = shalt.err (%p860_p11)  }
 0x162   :  { %739 = vsyncmov [#allocation3 + $0x4] }
 0x165   :  { %s740_s24 = vpop.sfrf %739 }
 0x166   :  { %p861_p12 = scmp.ne.s32.totalorder %s740_s24, 0 }
 0x168   :  { %744 = shalt.err (%p861_p12)  }
 0x169   :  { %746 = vsyncmov [#allocation3 + $0x5] }
 0x16c   :  { %s747_s1 = vpop.sfrf %746 }
 0x16d   :  { %p862_p13 = scmp.ne.s32.totalorder %s747_s1, 0 }
 0x16f   :  { %751 = shalt.err (%p862_p13)  }
 0x170   :  { %753 = vsyncmov [#allocation3 + $0x6] }
 0x173   :  { %s754_s2 = vpop.sfrf %753 }
 0x174   :  { %p863_p0 = scmp.ne.s32.totalorder %s754_s2, 0 }
 0x176   :  { %758 = shalt.err (%p863_p0)  }
 0x177   :  { %760 = vsyncmov [#allocation3 + $0x7] }
 0x17a   :  { %s761_s3 = vpop.sfrf %760 }
 0x17b   :  { %p864_p1 = scmp.ne.s32.totalorder %s761_s3, 0 }
 0x17d   :  { %765 = shalt.err (%p864_p1)  }

</bundles_post_ra>
